<compile_context>
chip_gen: v7x
topology: tpu7x:2x2x1
jax: 0.10.0
libtpu: 0.0.40
codegen_flags: <defaults>
</compile_context>

<pallas_src>
import functools

import jax
import jax.numpy as jnp
from jax.experimental import pallas as pl
from jax.experimental.pallas import tpu as pltpu


HIDDEN = 128       # fc1/fc2/fc3 width (matches the PyTorch defaults)
OUT_PAD = 128      # lane-dense padded output width


def _round_up(n, m):
    return ((n + m - 1) // m) * m


def qnet_kernel(x_ref, w1_ref, b1_ref, w2_ref, b2_ref, w3_ref, b3_ref,
                w4_ref, b4_ref, o_ref):
    cdt = w1_ref.dtype  # compute dtype feeding the MXU (bf16)
    # fc1 + relu  (MXU in bf16, accumulate f32; bias/ReLU in f32)
    h = jnp.dot(x_ref[...], w1_ref[...], preferred_element_type=jnp.float32)
    h = jnp.maximum(h + b1_ref[...], 0.0)
    # fc2 + relu
    h = jnp.dot(h.astype(cdt), w2_ref[...], preferred_element_type=jnp.float32)
    h = jnp.maximum(h + b2_ref[...], 0.0)
    # fc3 + relu
    h = jnp.dot(h.astype(cdt), w3_ref[...], preferred_element_type=jnp.float32)
    h = jnp.maximum(h + b3_ref[...], 0.0)
    # fc4 (no activation) — output block is lane-padded to 128 columns
    out = jnp.dot(h.astype(cdt), w4_ref[...], preferred_element_type=jnp.float32)
    o_ref[...] = (out + b4_ref[...]).astype(o_ref.dtype)


def qnetwork_forward(x, params, *, tile_b=256, compute_dtype=jnp.bfloat16):
    """x: [B, state_size] float32. params: w1..w4 ([in,out] f32), b1..b4 ([1,out] f32).

    Returns [B, action_size] float32 == relu-MLP forward of the PyTorch QNetwork.
    """
    B, state_size = x.shape
    action_size = params["w4"].shape[1]

    # --- batch tiling: fixed tile (clamped for small batches), pad B up -----------
    tile_b = max(16, min(tile_b, _round_up(B, 16)))   # multiple of 16 (bf16 sublanes)
    B_pad = _round_up(B, tile_b)
    if B_pad != B:
        x = jnp.pad(x, ((0, B_pad - B), (0, 0)))
    grid = (B_pad // tile_b,)

    # --- parameter prep: bf16 weights (halve DMA + feed MXU), f32 biases ----------
    w1 = params["w1"].astype(compute_dtype)
    w2 = params["w2"].astype(compute_dtype)
    w3 = params["w3"].astype(compute_dtype)
    # lane-dense output: pad fc4 to OUT_PAD columns with zeros
    w4 = jnp.zeros((HIDDEN, OUT_PAD), compute_dtype).at[:, :action_size].set(
        params["w4"].astype(compute_dtype))
    b1 = params["b1"].astype(jnp.float32)
    b2 = params["b2"].astype(jnp.float32)
    b3 = params["b3"].astype(jnp.float32)
    b4 = jnp.zeros((1, OUT_PAD), jnp.float32).at[:, :action_size].set(
        params["b4"].astype(jnp.float32))

    x = x.astype(compute_dtype)

    def full_spec(arr):
        # whole-array block, same block for every grid step (weights stay VMEM-resident)
        return pl.BlockSpec(arr.shape, lambda i: (0, 0))

    in_specs = [
        pl.BlockSpec((tile_b, state_size), lambda i: (i, 0)),   # x tiled over batch
        full_spec(w1), full_spec(b1),
        full_spec(w2), full_spec(b2),
        full_spec(w3), full_spec(b3),
        full_spec(w4), full_spec(b4),
    ]
    out_spec = pl.BlockSpec((tile_b, OUT_PAD), lambda i: (i, 0))

    # advisory cost hint for XLA's scheduler
    flops = 2 * B_pad * (state_size * HIDDEN + 2 * HIDDEN * HIDDEN + HIDDEN * OUT_PAD)
    bytes_accessed = (
        x.size * x.dtype.itemsize
        + sum(a.size * a.dtype.itemsize for a in (w1, w2, w3, w4, b1, b2, b3, b4))
        + B_pad * OUT_PAD * 4
    )
    cost = pl.CostEstimate(flops=flops, transcendentals=0,
                           bytes_accessed=bytes_accessed)

    out = pl.pallas_call(
        qnet_kernel,
        out_shape=jax.ShapeDtypeStruct((B_pad, OUT_PAD), jnp.float32),
        grid_spec=pltpu.PrefetchScalarGridSpec(
            num_scalar_prefetch=0,
            grid=grid,
            in_specs=in_specs,
            out_specs=out_spec,
        ),
        compiler_params=pltpu.CompilerParams(
            dimension_semantics=("parallel",),       # shard batch across TCs on v7x
            vmem_limit_bytes=16 * 1024 * 1024,       # tiny footprint; stays well under v7x's 32 MiB scoped default
        ),
        cost_estimate=cost,
    )(x, w1, b1, w2, b2, w3, b3, w4, b4)

    # drop batch padding and output lane padding
    return out[:B, :action_size]


def init_params(key, state_size, action_size,
                fc1_units=128, fc2_units=128, fc3_units=128):
    """Deterministic init mimicking torch.nn.Linear default (U(-1/sqrt(fan_in), +))."""
    dims = [(state_size, fc1_units), (fc1_units, fc2_units),
            (fc2_units, fc3_units), (fc3_units, action_size)]
    params = {}
    for idx, (fan_in, fan_out) in enumerate(dims, start=1):
        key, kw, kb = jax.random.split(key, 3)
        bound = 1.0 / jnp.sqrt(fan_in)
        params[f"w{idx}"] = jax.random.uniform(
            kw, (fan_in, fan_out), jnp.float32, -bound, bound)
        params[f"b{idx}"] = jax.random.uniform(
            kb, (1, fan_out), jnp.float32, -bound, bound)
    return params


def qnetwork_reference(x, params):
    h = jnp.maximum(x @ params["w1"] + params["b1"], 0.0)
    h = jnp.maximum(h @ params["w2"] + params["b2"], 0.0)
    h = jnp.maximum(h @ params["w3"] + params["b3"], 0.0)
    return h @ params["w4"] + params["b4"]


if __name__ == "__main__":
    batch = 8
    state_size = 8
    action_size = 4

    key = jax.random.PRNGKey(0)
    key, kx = jax.random.split(key)
    x = jax.random.normal(kx, (batch, state_size), jnp.float32)
    params = init_params(key, state_size, action_size)

    fwd = jax.jit(functools.partial(qnetwork_forward, tile_b=256))
    out = jax.block_until_ready(fwd(x, params))

    ref = qnetwork_reference(x, params)
    assert out.shape == (batch, action_size), out.shape
    # bf16 inputs/weights with f32 accumulation -> loosened tolerance vs f32 reference
    assert jnp.allclose(out, ref, atol=3e-2, rtol=3e-2), (
        float(jnp.max(jnp.abs(out - ref))))
    print("KERNEL_OK")
</pallas_src>

<mosaic_0001>
module attributes {stable_mosaic.version = 11 : i64} {
  func.func @qnet_kernel(%arg0: i32, %arg1: memref<16x8xbf16, #tpu.memory_space<vmem>>, %arg2: memref<8x128xbf16, #tpu.memory_space<vmem>>, %arg3: memref<1x128xf32, #tpu.memory_space<vmem>>, %arg4: memref<128x128xbf16, #tpu.memory_space<vmem>>, %arg5: memref<1x128xf32, #tpu.memory_space<vmem>>, %arg6: memref<128x128xbf16, #tpu.memory_space<vmem>>, %arg7: memref<1x128xf32, #tpu.memory_space<vmem>>, %arg8: memref<128x128xbf16, #tpu.memory_space<vmem>>, %arg9: memref<1x128xf32, #tpu.memory_space<vmem>>, %arg10: memref<16x128xf32, #tpu.memory_space<vmem>>) attributes {dimension_semantics = [#tpu.dimension_semantics<parallel>], iteration_bounds = array<i64: 1>, scalar_prefetch = 0 : i64, scratch_operands = 0 : i64, tpu.core_type = #tpu.core_type<tc>, window_params = [{transform_indices = @transform_0, window_bounds = array<i64: 16, 8>}, {pipeline_mode = #tpu.pipeline_mode<synchronous>, transform_indices = @transform_1, window_bounds = array<i64: 8, 128>}, {pipeline_mode = #tpu.pipeline_mode<synchronous>, transform_indices = @transform_2, window_bounds = array<i64: 1, 128>}, {pipeline_mode = #tpu.pipeline_mode<synchronous>, transform_indices = @transform_3, window_bounds = array<i64: 128, 128>}, {pipeline_mode = #tpu.pipeline_mode<synchronous>, transform_indices = @transform_4, window_bounds = array<i64: 1, 128>}, {pipeline_mode = #tpu.pipeline_mode<synchronous>, transform_indices = @transform_5, window_bounds = array<i64: 128, 128>}, {pipeline_mode = #tpu.pipeline_mode<synchronous>, transform_indices = @transform_6, window_bounds = array<i64: 1, 128>}, {pipeline_mode = #tpu.pipeline_mode<synchronous>, transform_indices = @transform_7, window_bounds = array<i64: 128, 128>}, {pipeline_mode = #tpu.pipeline_mode<synchronous>, transform_indices = @transform_8, window_bounds = array<i64: 1, 128>}, {transform_indices = @transform_9, window_bounds = array<i64: 16, 128>}]} {
    %c0 = arith.constant 0 : index
    %c0_0 = arith.constant 0 : index
    %0 = vector.load %arg1[%c0, %c0_0] : memref<16x8xbf16, #tpu.memory_space<vmem>>, vector<16x8xbf16>
    %c0_1 = arith.constant 0 : index
    %c0_2 = arith.constant 0 : index
    %1 = vector.load %arg2[%c0_1, %c0_2] : memref<8x128xbf16, #tpu.memory_space<vmem>>, vector<8x128xbf16>
    %cst = arith.constant dense<0.000000e+00> : vector<16x128xf32>
    %2 = tpu.matmul %0, %1, %cst {dimension_numbers = #tpu.dot_dimension_numbers<[1], [0], [0], [1], [0, 0, 1, 1], [], []>} : vector<16x8xbf16>, vector<8x128xbf16>, vector<16x128xf32> -> vector<16x128xf32>
    %c0_3 = arith.constant 0 : index
    %c0_4 = arith.constant 0 : index
    %3 = vector.load %arg3[%c0_3, %c0_4] : memref<1x128xf32, #tpu.memory_space<vmem>>, vector<1x128xf32>
    %4 = vector.broadcast %3 : vector<1x128xf32> to vector<16x128xf32>
    %5 = arith.addf %2, %4 : vector<16x128xf32>
    %cst_5 = arith.constant 0.000000e+00 : f32
    %6 = vector.broadcast %cst_5 : f32 to vector<16x128xf32>
    %7 = arith.maximumf %5, %6 : vector<16x128xf32>
    %8 = arith.truncf %7 : vector<16x128xf32> to vector<16x128xbf16>
    %c0_6 = arith.constant 0 : index
    %c0_7 = arith.constant 0 : index
    %9 = vector.load %arg4[%c0_6, %c0_7] : memref<128x128xbf16, #tpu.memory_space<vmem>>, vector<128x128xbf16>
    %cst_8 = arith.constant dense<0.000000e+00> : vector<16x128xf32>
    %10 = tpu.matmul %8, %9, %cst_8 {dimension_numbers = #tpu.dot_dimension_numbers<[1], [0], [0], [1], [0, 0, 1, 1], [], []>} : vector<16x128xbf16>, vector<128x128xbf16>, vector<16x128xf32> -> vector<16x128xf32>
    %c0_9 = arith.constant 0 : index
    %c0_10 = arith.constant 0 : index
    %11 = vector.load %arg5[%c0_9, %c0_10] : memref<1x128xf32, #tpu.memory_space<vmem>>, vector<1x128xf32>
    %12 = vector.broadcast %11 : vector<1x128xf32> to vector<16x128xf32>
    %13 = arith.addf %10, %12 : vector<16x128xf32>
    %cst_11 = arith.constant 0.000000e+00 : f32
    %14 = vector.broadcast %cst_11 : f32 to vector<16x128xf32>
    %15 = arith.maximumf %13, %14 : vector<16x128xf32>
    %16 = arith.truncf %15 : vector<16x128xf32> to vector<16x128xbf16>
    %c0_12 = arith.constant 0 : index
    %c0_13 = arith.constant 0 : index
    %17 = vector.load %arg6[%c0_12, %c0_13] : memref<128x128xbf16, #tpu.memory_space<vmem>>, vector<128x128xbf16>
    %cst_14 = arith.constant dense<0.000000e+00> : vector<16x128xf32>
    %18 = tpu.matmul %16, %17, %cst_14 {dimension_numbers = #tpu.dot_dimension_numbers<[1], [0], [0], [1], [0, 0, 1, 1], [], []>} : vector<16x128xbf16>, vector<128x128xbf16>, vector<16x128xf32> -> vector<16x128xf32>
    %c0_15 = arith.constant 0 : index
    %c0_16 = arith.constant 0 : index
    %19 = vector.load %arg7[%c0_15, %c0_16] : memref<1x128xf32, #tpu.memory_space<vmem>>, vector<1x128xf32>
    %20 = vector.broadcast %19 : vector<1x128xf32> to vector<16x128xf32>
    %21 = arith.addf %18, %20 : vector<16x128xf32>
    %cst_17 = arith.constant 0.000000e+00 : f32
    %22 = vector.broadcast %cst_17 : f32 to vector<16x128xf32>
    %23 = arith.maximumf %21, %22 : vector<16x128xf32>
    %24 = arith.truncf %23 : vector<16x128xf32> to vector<16x128xbf16>
    %c0_18 = arith.constant 0 : index
    %c0_19 = arith.constant 0 : index
    %25 = vector.load %arg8[%c0_18, %c0_19] : memref<128x128xbf16, #tpu.memory_space<vmem>>, vector<128x128xbf16>
    %cst_20 = arith.constant dense<0.000000e+00> : vector<16x128xf32>
    %26 = tpu.matmul %24, %25, %cst_20 {dimension_numbers = #tpu.dot_dimension_numbers<[1], [0], [0], [1], [0, 0, 1, 1], [], []>} : vector<16x128xbf16>, vector<128x128xbf16>, vector<16x128xf32> -> vector<16x128xf32>
    %c0_21 = arith.constant 0 : index
    %c0_22 = arith.constant 0 : index
    %27 = vector.load %arg9[%c0_21, %c0_22] : memref<1x128xf32, #tpu.memory_space<vmem>>, vector<1x128xf32>
    %28 = vector.broadcast %27 : vector<1x128xf32> to vector<16x128xf32>
    %29 = arith.addf %26, %28 : vector<16x128xf32>
    %c0_23 = arith.constant 0 : index
    %c0_24 = arith.constant 0 : index
    %30 = vector.load %arg10[%c0_23, %c0_24] : memref<16x128xf32, #tpu.memory_space<vmem>>, vector<16x128xf32>
    tpu.vector_store %arg10[%c0_23, %c0_24], %29 {strides = array<i32>} : memref<16x128xf32, #tpu.memory_space<vmem>>, vector<16x128xf32>,
    return
  }
  func.func @transform_0(%arg0: i32) -> (i32, i32) {
    %c0_i32 = arith.constant 0 : i32
    %c0_i32_0 = arith.constant 0 : i32
    return %arg0, %c0_i32 : i32, i32
  }
  func.func @transform_1(%arg0: i32) -> (i32, i32) {
    %c0_i32 = arith.constant 0 : i32
    %c0_i32_0 = arith.constant 0 : i32
    %c0_i32_1 = arith.constant 0 : i32
    return %c0_i32, %c0_i32_0 : i32, i32
  }
  func.func @transform_2(%arg0: i32) -> (i32, i32) {
    %c0_i32 = arith.constant 0 : i32
    %c0_i32_0 = arith.constant 0 : i32
    %c0_i32_1 = arith.constant 0 : i32
    return %c0_i32, %c0_i32_0 : i32, i32
  }
  func.func @transform_3(%arg0: i32) -> (i32, i32) {
    %c0_i32 = arith.constant 0 : i32
    %c0_i32_0 = arith.constant 0 : i32
    %c0_i32_1 = arith.constant 0 : i32
    return %c0_i32, %c0_i32_0 : i32, i32
  }
  func.func @transform_4(%arg0: i32) -> (i32, i32) {
    %c0_i32 = arith.constant 0 : i32
    %c0_i32_0 = arith.constant 0 : i32
    %c0_i32_1 = arith.constant 0 : i32
    return %c0_i32, %c0_i32_0 : i32, i32
  }
  func.func @transform_5(%arg0: i32) -> (i32, i32) {
    %c0_i32 = arith.constant 0 : i32
    %c0_i32_0 = arith.constant 0 : i32
    %c0_i32_1 = arith.constant 0 : i32
    return %c0_i32, %c0_i32_0 : i32, i32
  }
  func.func @transform_6(%arg0: i32) -> (i32, i32) {
    %c0_i32 = arith.constant 0 : i32
    %c0_i32_0 = arith.constant 0 : i32
    %c0_i32_1 = arith.constant 0 : i32
    return %c0_i32, %c0_i32_0 : i32, i32
  }
  func.func @transform_7(%arg0: i32) -> (i32, i32) {
    %c0_i32 = arith.constant 0 : i32
    %c0_i32_0 = arith.constant 0 : i32
    %c0_i32_1 = arith.constant 0 : i32
    return %c0_i32, %c0_i32_0 : i32, i32
  }
  func.func @transform_8(%arg0: i32) -> (i32, i32) {
    %c0_i32 = arith.constant 0 : i32
    %c0_i32_0 = arith.constant 0 : i32
    %c0_i32_1 = arith.constant 0 : i32
    return %c0_i32, %c0_i32_0 : i32, i32
  }
  func.func @transform_9(%arg0: i32) -> (i32, i32) {
    %c0_i32 = arith.constant 0 : i32
    %c0_i32_0 = arith.constant 0 : i32
    return %arg0, %c0_i32 : i32, i32
  }
}

</mosaic_0001>

<bundles_post_ra>
// kernel: qnetwork_forward.1
= control target key start
LH: loop header
LB: loop body
LE: loop exit
PB: predicated region body
PF: predicated region fallthrough
CT: control target
= control target key end

     0   :  { %vm52_vm0 = vcmask 1043456   ;;  %v600_v0 = vmov 0.0   ;;  %vm601_vm1 = vmmov 0   ;;  %vm48_vm2 = vcmask 64512   ;;  %s781_s1 = inlined_call_operand.vmem [shape: bf16[8,128], index: 1, kind: input, shape index: {}]   ;;  %s782_s0 = inlined_call_operand.vmem [shape: bf16[16,8], index: 0, kind: input, shape index: {}]   ;;  %s783_s3 = inlined_call_operand.vmem [shape: bf16[128,128], index: 3, kind: input, shape index: {}]   ;;  %s784_s5 = inlined_call_operand.vmem [shape: bf16[128,128], index: 5, kind: input, shape index: {}]   ;;  %s785_s2 = inlined_call_operand.vmem [shape: f32[1,128], index: 2, kind: input, shape index: {}]   ;;  %s786_s7 = inlined_call_operand.vmem [shape: bf16[128,128], index: 7, kind: input, shape index: {}]   ;;  %s787_s4 = inlined_call_operand.vmem [shape: f32[1,128], index: 4, kind: input, shape index: {}]   ;;  %s788_s6 = inlined_call_operand.vmem [shape: f32[1,128], index: 6, kind: input, shape index: {}]   ;;  %s789_s8 = inlined_call_operand.vmem [shape: f32[1,128], index: 8, kind: input, shape index: {}]   ;;  %s790_s9 = inlined_call_operand.vmem [shape: f32[16,128], index: 9, kind: output, shape index: {}]  }
   0x1   :  { %507 = vmatprep.subr.bf16.mxu0 %v600_v0  ;;  %v35_v1 = vld [vmem:[%s781_s1] sm:$0xf]  ;;  %509 = vmatprep.mubr.msk.bf16.mxu0 %vm601_vm1, %v600_v0  ;;  %v577_v5 = vld [vmem:[%s783_s3 + $0x8] sm:$0xff]   ;;  %v578_v6 = vld [vmem:[%s783_s3 + $0x10] sm:$0xff]  }
   0x2   :  { %v54_v2 = vsel %vm52_vm0, %v35_v1, 0  ;;  %v575_v3 = vld [vmem:[%s782_s0] sm:$0xff]   ;;  %513 = vmatprep.subr.bf16.mxu1 %v600_v0  ;;  %529 = vmatprep.mubr.msk.bf16.mxu1 %vm601_vm1, %v600_v0  ;;  %v579_v7 = vld [vmem:[%s783_s3 + $0x18] sm:$0xff]   ;;  %v581_v9 = vld [vmem:[%s783_s3 + $0x28] sm:$0xff]  }
   0x3   :  { %508 = vmatpush3.bf16.msra.mxu0 %v54_v2  ;;  %v576_v4 = vld [vmem:[%s783_s3] sm:$0xff]   ;;  %v582_v10 = vld [vmem:[%s783_s3 + $0x30] sm:$0xff]   ;;  %v583_v11 = vld [vmem:[%s783_s3 + $0x38] sm:$0xff]  }
   0x4   :  { %533 = vmatprep.subr.bf16.mxu0 %v600_v0  ;;  %514 = vmatpush3.bf16.msra.mxu1 %v576_v4  ;;  %v580_v8 = vld [vmem:[%s783_s3 + $0x20] sm:$0xff]   ;;  %v585_v13 = vld [vmem:[%s784_s5 + $0x8] sm:$0xff]   ;;  %v586_v14 = vld [vmem:[%s784_s5 + $0x10] sm:$0xff]  }
   0x5   :  { %515 = vmatprep.subr.bf16.mxu1 %v600_v0  ;;  %v584_v12 = vld [vmem:[%s784_s5] sm:$0xff]   ;;  %v587_v15 = vld [vmem:[%s784_s5 + $0x18] sm:$0xff]   ;;  %v589_v17 = vld [vmem:[%s784_s5 + $0x28] sm:$0xff]  }
   0x6   :  { %510 = vmatmul.mubr.msk.bf16.vlgmr.msra.gmra.mrb[0].mxu0 %vm48_vm2, %v575_v3  ;;  %v588_v16 = vld [vmem:[%s784_s5 + $0x20] sm:$0xff]   ;;  %v590_v28 = vld [vmem:[%s784_s5 + $0x30] sm:$0xff]   ;;  %v591_v29 = vld [vmem:[%s784_s5 + $0x38] sm:$0xff]  }
   0x7   :  { %549 = vmatprep.mubr.msk.bf16.mxu0 %vm601_vm1, %v600_v0  ;;  %534 = vmatpush3.bf16.msra.mxu0 %v584_v12  ;;  %v448_v18 = vld [vmem:[%s785_s2] ss:$0 sm:$0xff]  ;;  %v593_v31 = vld [vmem:[%s786_s7 + $0x8] sm:$0xff]   ;;  %v594_v32 = vld [vmem:[%s786_s7 + $0x10] sm:$0xff]  }
   0x8   :  { %516 = vmatpush3.bf16.msra.mxu1 %v577_v5  ;;  %535 = vmatprep.subr.bf16.mxu0 %v600_v0  ;;  %v592_v30 = vld [vmem:[%s786_s7] sm:$0xff]   ;;  %v595_v33 = vld [vmem:[%s786_s7 + $0x18] sm:$0xff]   ;;  %v597_v35 = vld [vmem:[%s786_s7 + $0x28] sm:$0xff]  }
   0x9   :  { %517 = vmatprep.subr.bf16.mxu1 %v600_v0  ;;  %v596_v34 = vld [vmem:[%s786_s7 + $0x20] sm:$0xff]   ;;  %v598_v46 = vld [vmem:[%s786_s7 + $0x30] sm:$0xff]   ;;  %v599_v47 = vld [vmem:[%s786_s7 + $0x38] sm:$0xff]  }
   0xa   :  { %v451_v36 = vld [vmem:[%s787_s4] ss:$0 sm:$0xff] }
   0xb   :  { %536 = vmatpush3.bf16.msra.mxu0 %v585_v13  ;;  %v460_v48 = vld [vmem:[%s788_s6] ss:$0 sm:$0xff] }
   0xc   :  { %518 = vmatpush3.bf16.msra.mxu1 %v578_v6  ;;  %537 = vmatprep.subr.bf16.mxu0 %v600_v0  ;;  %v469_v58 = vld [vmem:[%s789_s8] ss:$0 sm:$0xff] }
   0xd   :  { %519 = vmatprep.subr.bf16.mxu1 %v600_v0 }
   0xf   :  { %538 = vmatpush3.bf16.msra.mxu0 %v586_v14 }
  0x10   :  { %520 = vmatpush3.bf16.msra.mxu1 %v579_v7  ;;  %539 = vmatprep.subr.bf16.mxu0 %v600_v0 }
  0x11   :  { %521 = vmatprep.subr.bf16.mxu1 %v600_v0 }
  0x13   :  { %540 = vmatpush3.bf16.msra.mxu0 %v587_v15 }
  0x14   :  { %522 = vmatpush3.bf16.msra.mxu1 %v580_v8  ;;  %541 = vmatprep.subr.bf16.mxu0 %v600_v0 }
  0x15   :  { %523 = vmatprep.subr.bf16.mxu1 %v600_v0 }
  0x17   :  { %542 = vmatpush3.bf16.msra.mxu0 %v588_v16 }
  0x18   :  { %524 = vmatpush3.bf16.msra.mxu1 %v581_v9  ;;  %543 = vmatprep.subr.bf16.mxu0 %v600_v0 }
  0x19   :  { %525 = vmatprep.subr.bf16.mxu1 %v600_v0 }
  0x1b   :  { %544 = vmatpush3.bf16.msra.mxu0 %v589_v17 }
  0x1c   :  { %526 = vmatpush3.bf16.msra.mxu1 %v582_v10  ;;  %545 = vmatprep.subr.bf16.mxu0 %v600_v0 }
  0x1d   :  { %527 = vmatprep.subr.bf16.mxu1 %v600_v0 }
  0x1f   :  { %546 = vmatpush3.bf16.msra.mxu0 %v590_v28 }
  0x20   :  { %528 = vmatpush3.bf16.msra.mxu1 %v583_v11  ;;  %547 = vmatprep.subr.bf16.mxu0 %v600_v0 }
  0x21   :  { %553 = vmatprep.subr.bf16.mxu1 %v600_v0 }
  0x23   :  { %548 = vmatpush3.bf16.msra.mxu0 %v591_v29 }
  0xd9   :  { %v90_v19 = vpop.f32.mrb[0].mxu0 }
  0xda   :  { %v91_v20 = vadd.f32 %v448_v18, %v90_v19  ;;  %v511_v21 = vpop.f32.mrb[1].mxu0 }
  0xdb   :  { %v93_v22 = vpop.f32.mrb[2].mxu0 }
  0xdc   :  { %v94_v23 = vadd.f32 %v448_v18, %v93_v22  ;;  %v512_v24 = vpop.f32.mrb[3].mxu0  ;;  %v97_v25 = vmax.f32 %v91_v20, 0.0 }
  0xde   :  { %v98_v26 = vmax.f32 %v94_v23, 0.0 }
  0xe0   :  { %v99_v27 = vpack.c.bf16 %v98_v26, %v97_v25 }
  0xe2   :  { %530 = vmatmul.mubr.bf16.vlgmr.msra.gmra.mrb[0].mxu1 %v99_v27 }
  0xe3   :  { %569 = vmatprep.mubr.msk.bf16.mxu1 %vm601_vm1, %v600_v0  ;;  %554 = vmatpush3.bf16.msra.mxu1 %v592_v30 }
  0xe4   :  { %555 = vmatprep.subr.bf16.mxu1 %v600_v0 }
  0xe7   :  { %556 = vmatpush3.bf16.msra.mxu1 %v593_v31 }
  0xe8   :  { %557 = vmatprep.subr.bf16.mxu1 %v600_v0 }
  0xeb   :  { %558 = vmatpush3.bf16.msra.mxu1 %v594_v32 }
  0xec   :  { %559 = vmatprep.subr.bf16.mxu1 %v600_v0 }
  0xef   :  { %560 = vmatpush3.bf16.msra.mxu1 %v595_v33 }
  0xf0   :  { %561 = vmatprep.subr.bf16.mxu1 %v600_v0 }
  0xf3   :  { %562 = vmatpush3.bf16.msra.mxu1 %v596_v34 }
  0xf4   :  { %563 = vmatprep.subr.bf16.mxu1 %v600_v0 }
  0xf7   :  { %564 = vmatpush3.bf16.msra.mxu1 %v597_v35 }
  0xf8   :  { %565 = vmatprep.subr.bf16.mxu1 %v600_v0 }
  0xfb   :  { %566 = vmatpush3.bf16.msra.mxu1 %v598_v46 }
  0xfc   :  { %567 = vmatprep.subr.bf16.mxu1 %v600_v0 }
  0xff   :  { %568 = vmatpush3.bf16.msra.mxu1 %v599_v47 }
 0x1b5   :  { %v205_v37 = vpop.f32.mrb[0].mxu1 }
 0x1b6   :  { %v206_v38 = vadd.f32 %v451_v36, %v205_v37  ;;  %v531_v39 = vpop.f32.mrb[1].mxu1 }
 0x1b7   :  { %v208_v40 = vpop.f32.mrb[2].mxu1 }
 0x1b8   :  { %v209_v41 = vadd.f32 %v451_v36, %v208_v40  ;;  %v532_v42 = vpop.f32.mrb[3].mxu1  ;;  %v212_v43 = vmax.f32 %v206_v38, 0.0 }
 0x1ba   :  { %v213_v44 = vmax.f32 %v209_v41, 0.0 }
 0x1bc   :  { %v214_v45 = vpack.c.bf16 %v213_v44, %v212_v43 }
 0x1be   :  { %550 = vmatmul.mubr.bf16.vlgmr.msra.gmra.mrb[4].mxu0 %v214_v45 }
 0x291   :  { %v320_v49 = vpop.f32.mrb[4].mxu0 }
 0x292   :  { %v321_v50 = vadd.f32 %v460_v48, %v320_v49  ;;  %v551_v51 = vpop.f32.mrb[5].mxu0 }
 0x293   :  { %v323_v52 = vpop.f32.mrb[6].mxu0 }
 0x294   :  { %v324_v53 = vadd.f32 %v460_v48, %v323_v52  ;;  %v552_v54 = vpop.f32.mrb[7].mxu0  ;;  %v327_v55 = vmax.f32 %v321_v50, 0.0 }
 0x296   :  { %v328_v56 = vmax.f32 %v324_v53, 0.0 }
 0x298   :  { %v329_v57 = vpack.c.bf16 %v328_v56, %v327_v55 }
 0x29a   :  { %570 = vmatmul.mubr.bf16.vlgmr.msra.gmra.mrb[4].mxu1 %v329_v57 }
 0x36d   :  { %v435_v59 = vpop.f32.mrb[4].mxu1 }
 0x36e   :  { %v436_v60 = vadd.f32 %v469_v58, %v435_v59  ;;  %v571_v61 = vpop.f32.mrb[5].mxu1 }
 0x36f   :  { %v438_v62 = vpop.f32.mrb[6].mxu1 }
 0x370   :  { %442 = vst [vmem:[%s790_s9] sm:$0xff] %v436_v60  ;;  %v439_v63 = vadd.f32 %v469_v58, %v438_v62  ;;  %v572_v0 = vpop.f32.mrb[7].mxu1 }
 0x372   :  { %443 = vst [vmem:[%s790_s9 + $0x8] sm:$0xff] %v439_v63 }

</bundles_post_ra>
